<compile_context>
chip_gen: v7x
topology: tpu7x:2x2x1
jax: 0.10.0
libtpu: 0.0.40
codegen_flags: <defaults>
</compile_context>

<pallas_src>
import math
import jax
import jax.numpy as jnp
from jax.experimental import pallas as pl
from jax.experimental.pallas import tpu as pltpu


def _critic_kernel(x_ref, w1_ref, b1_ref, w2_ref, b2_ref, w3_ref, b3_ref, o_ref):
    # Layer 1: Linear + ReLU (MXU matmul, f32 accumulate; bias/ReLU in f32)
    h = jnp.dot(x_ref[...], w1_ref[...], preferred_element_type=jnp.float32)
    h = jnp.maximum(h + b1_ref[...], 0.0)

    # Layer 2: Linear + ReLU (cast back to weight dtype so bf16 mode hits the MXU fast path)
    h = jnp.dot(h.astype(w2_ref.dtype), w2_ref[...], preferred_element_type=jnp.float32)
    h = jnp.maximum(h + b2_ref[...], 0.0)

    # Layer 3: out_features == 1 -> VPU multiply + lane reduction instead of an
    # N=1 MXU matmul.  w3_ref is (1, net_width) and broadcasts over rows.
    v = jnp.sum(h * w3_ref[...], axis=-1)                 # (TILE_B,)
    # Lane-dense store: the output block is (1, TILE_B).
    o_ref[...] = (v.reshape(1, -1) + b3_ref[...]).astype(o_ref.dtype)


def critic_forward(state, params, *, tile_b=None, use_bf16=False):
    """state: (batch, state_dim) f32. params: dict of w1,b1,w2,b2,w3,b3.
    Returns (batch, 1) f32 values."""
    w1, b1, w2, b2, w3, b3 = (params[k] for k in ("w1", "b1", "w2", "b2", "w3", "b3"))
    batch, state_dim = state.shape
    net_width = w1.shape[1]

    # Pick a batch tile: single tile (rounded up to a sublane multiple of 8)
    # for small batches, otherwise 512-row tiles (multiple of 128 so the
    # lane-dense (1, TILE_B) output blocks stay unmasked across tiles).
    if tile_b is None:
        tile_b = ((batch + 7) // 8) * 8 if batch <= 512 else 512
    padded = ((batch + tile_b - 1) // tile_b) * tile_b
    num_tiles = pl.cdiv(padded, tile_b)

    x = state
    if padded != batch:
        x = jnp.pad(x, ((0, padded - batch), (0, 0)))

    # Optional bf16 streaming for the MXU matmuls (v6e/v7x); f32 accumulate kept.
    compute_dtype = jnp.bfloat16 if use_bf16 else x.dtype
    x = x.astype(compute_dtype)
    w1c = w1.astype(compute_dtype)
    w2c = w2.astype(compute_dtype)

    # Layer-3 weight presented as a single broadcastable row.
    w3_row = w3.reshape(1, net_width).astype(jnp.float32)

    out = pl.pallas_call(
        _critic_kernel,
        out_shape=jax.ShapeDtypeStruct((1, padded), jnp.float32),
        grid=(num_tiles,),
        in_specs=[
            # Streamed: one batch tile per grid step (double-buffered by Pallas).
            pl.BlockSpec((tile_b, state_dim), lambda i: (i, 0)),
            # Resident weights/biases: constant index_map -> single VMEM copy.
            pl.BlockSpec(w1c.shape, lambda i: (0, 0)),
            pl.BlockSpec(b1.shape, lambda i: (0, 0)),
            pl.BlockSpec(w2c.shape, lambda i: (0, 0)),
            pl.BlockSpec(b2.shape, lambda i: (0, 0)),
            pl.BlockSpec(w3_row.shape, lambda i: (0, 0)),
            pl.BlockSpec(b3.shape, lambda i: (0, 0)),
        ],
        # Lane-dense output slab: block (1, tile_b) along the lane axis.
        out_specs=pl.BlockSpec((1, tile_b), lambda i: (0, i)),
        compiler_params=pltpu.CompilerParams(
            dimension_semantics=("parallel",),
        ),
    )(x, w1c, b1, w2c, b2, w3_row, b3)

    return out[0, :batch].reshape(batch, 1)


def init_critic_params(key, state_dim, net_width):
    """Deterministic init mirroring PyTorch nn.Linear default
    (U[-1/sqrt(fan_in), +1/sqrt(fan_in)]).  Weights kept as (in, out) for x @ W."""
    keys = jax.random.split(key, 6)

    def linear(kw, kb, fan_in, fan_out):
        bound = 1.0 / math.sqrt(fan_in)
        w = jax.random.uniform(kw, (fan_in, fan_out), jnp.float32, -bound, bound)
        b = jax.random.uniform(kb, (1, fan_out), jnp.float32, -bound, bound)
        return w, b

    w1, b1 = linear(keys[0], keys[1], state_dim, net_width)
    w2, b2 = linear(keys[2], keys[3], net_width, net_width)
    w3, b3 = linear(keys[4], keys[5], net_width, 1)
    return {"w1": w1, "b1": b1, "w2": w2, "b2": b2, "w3": w3, "b3": b3}


def _reference_forward(state, p):
    h = jnp.maximum(state @ p["w1"] + p["b1"], 0.0)
    h = jnp.maximum(h @ p["w2"] + p["b2"], 0.0)
    return h @ p["w3"] + p["b3"]


if __name__ == "__main__":
    key = jax.random.PRNGKey(0)
    k_params, k_state, k_state2 = jax.random.split(key, 3)

    batch, state_dim, net_width = 8, 16, 32
    params = init_critic_params(k_params, state_dim, net_width)

    # Small single-tile case.
    state = jax.random.normal(k_state, (batch, state_dim), jnp.float32)
    v = jax.block_until_ready(critic_forward(state, params))
    v_ref = _reference_forward(state, params)
    assert v.shape == (batch, 1), v.shape
    assert jnp.allclose(v, v_ref, atol=1e-5, rtol=1e-5), "mismatch vs JAX reference (small)"

    # Multi-tile case: exercises the batch grid, resident weights, padding and
    # the lane-dense multi-block output path.
    big_batch = 1000
    state_big = jax.random.normal(k_state2, (big_batch, state_dim), jnp.float32)
    v_big = jax.block_until_ready(critic_forward(state_big, params, tile_b=512))
    v_big_ref = _reference_forward(state_big, params)
    assert v_big.shape == (big_batch, 1), v_big.shape
    assert jnp.allclose(v_big, v_big_ref, atol=1e-5, rtol=1e-5), "mismatch vs JAX reference (big)"

    print("KERNEL_OK")
</pallas_src>

<mosaic_0001>
module attributes {stable_mosaic.version = 11 : i64} {
  func.func @_critic_kernel(%arg0: i32, %arg1: memref<8x16xf32, #tpu.memory_space<vmem>>, %arg2: memref<16x32xf32, #tpu.memory_space<vmem>>, %arg3: memref<1x32xf32, #tpu.memory_space<vmem>>, %arg4: memref<32x32xf32, #tpu.memory_space<vmem>>, %arg5: memref<1x32xf32, #tpu.memory_space<vmem>>, %arg6: memref<1x32xf32, #tpu.memory_space<vmem>>, %arg7: memref<1x1xf32, #tpu.memory_space<vmem>>, %arg8: memref<1x8xf32, #tpu.memory_space<vmem>>) attributes {dimension_semantics = [#tpu.dimension_semantics<parallel>], iteration_bounds = array<i64: 1>, scalar_prefetch = 0 : i64, scratch_operands = 0 : i64, tpu.core_type = #tpu.core_type<tc>, window_params = [{transform_indices = @transform_0, window_bounds = array<i64: 8, 16>}, {pipeline_mode = #tpu.pipeline_mode<synchronous>, transform_indices = @transform_1, window_bounds = array<i64: 16, 32>}, {pipeline_mode = #tpu.pipeline_mode<synchronous>, transform_indices = @transform_2, window_bounds = array<i64: 1, 32>}, {pipeline_mode = #tpu.pipeline_mode<synchronous>, transform_indices = @transform_3, window_bounds = array<i64: 32, 32>}, {pipeline_mode = #tpu.pipeline_mode<synchronous>, transform_indices = @transform_4, window_bounds = array<i64: 1, 32>}, {pipeline_mode = #tpu.pipeline_mode<synchronous>, transform_indices = @transform_5, window_bounds = array<i64: 1, 32>}, {pipeline_mode = #tpu.pipeline_mode<synchronous>, transform_indices = @transform_6, window_bounds = array<i64: 1, 1>}, {transform_indices = @transform_7, window_bounds = array<i64: 1, 8>}]} {
    %c0 = arith.constant 0 : index
    %c0_0 = arith.constant 0 : index
    %0 = vector.load %arg1[%c0, %c0_0] : memref<8x16xf32, #tpu.memory_space<vmem>>, vector<8x16xf32>
    %c0_1 = arith.constant 0 : index
    %c0_2 = arith.constant 0 : index
    %1 = vector.load %arg2[%c0_1, %c0_2] : memref<16x32xf32, #tpu.memory_space<vmem>>, vector<16x32xf32>
    %cst = arith.constant dense<0.000000e+00> : vector<8x32xf32>
    %2 = tpu.matmul %0, %1, %cst {dimension_numbers = #tpu.dot_dimension_numbers<[1], [0], [0], [1], [0, 0, 1, 1], [], []>} : vector<8x16xf32>, vector<16x32xf32>, vector<8x32xf32> -> vector<8x32xf32>
    %c0_3 = arith.constant 0 : index
    %c0_4 = arith.constant 0 : index
    %3 = vector.load %arg3[%c0_3, %c0_4] : memref<1x32xf32, #tpu.memory_space<vmem>>, vector<1x32xf32>
    %4 = vector.broadcast %3 : vector<1x32xf32> to vector<8x32xf32>
    %5 = arith.addf %2, %4 : vector<8x32xf32>
    %cst_5 = arith.constant 0.000000e+00 : f32
    %6 = vector.broadcast %cst_5 : f32 to vector<8x32xf32>
    %7 = arith.maximumf %5, %6 : vector<8x32xf32>
    %c0_6 = arith.constant 0 : index
    %c0_7 = arith.constant 0 : index
    %8 = vector.load %arg4[%c0_6, %c0_7] : memref<32x32xf32, #tpu.memory_space<vmem>>, vector<32x32xf32>
    %cst_8 = arith.constant dense<0.000000e+00> : vector<8x32xf32>
    %9 = tpu.matmul %7, %8, %cst_8 {dimension_numbers = #tpu.dot_dimension_numbers<[1], [0], [0], [1], [0, 0, 1, 1], [], []>} : vector<8x32xf32>, vector<32x32xf32>, vector<8x32xf32> -> vector<8x32xf32>
    %c0_9 = arith.constant 0 : index
    %c0_10 = arith.constant 0 : index
    %10 = vector.load %arg5[%c0_9, %c0_10] : memref<1x32xf32, #tpu.memory_space<vmem>>, vector<1x32xf32>
    %11 = vector.broadcast %10 : vector<1x32xf32> to vector<8x32xf32>
    %12 = arith.addf %9, %11 : vector<8x32xf32>
    %cst_11 = arith.constant 0.000000e+00 : f32
    %13 = vector.broadcast %cst_11 : f32 to vector<8x32xf32>
    %14 = arith.maximumf %12, %13 : vector<8x32xf32>
    %c0_12 = arith.constant 0 : index
    %c0_13 = arith.constant 0 : index
    %15 = vector.load %arg6[%c0_12, %c0_13] : memref<1x32xf32, #tpu.memory_space<vmem>>, vector<1x32xf32>
    %16 = vector.broadcast %15 : vector<1x32xf32> to vector<8x32xf32>
    %17 = arith.mulf %14, %16 : vector<8x32xf32>
    %cst_14 = arith.constant dense<0.000000e+00> : vector<8xf32>
    %18 = vector.multi_reduction <add>, %17, %cst_14 [1] : vector<8x32xf32> to vector<8xf32>
    %19 = vector.shape_cast %18 : vector<8xf32> to vector<1x8xf32>
    %c0_15 = arith.constant 0 : index
    %c0_16 = arith.constant 0 : index
    %20 = vector.load %arg7[%c0_15, %c0_16] : memref<1x1xf32, #tpu.memory_space<vmem>>, vector<1x1xf32>
    %21 = vector.broadcast %20 : vector<1x1xf32> to vector<1x8xf32>
    %22 = arith.addf %19, %21 : vector<1x8xf32>
    %c0_17 = arith.constant 0 : index
    %c0_18 = arith.constant 0 : index
    %23 = vector.load %arg8[%c0_17, %c0_18] : memref<1x8xf32, #tpu.memory_space<vmem>>, vector<1x8xf32>
    tpu.vector_store %arg8[%c0_17, %c0_18], %22 {strides = array<i32>} : memref<1x8xf32, #tpu.memory_space<vmem>>, vector<1x8xf32>,
    return
  }
  func.func @transform_0(%arg0: i32) -> (i32, i32) {
    %c0_i32 = arith.constant 0 : i32
    %c0_i32_0 = arith.constant 0 : i32
    return %arg0, %c0_i32 : i32, i32
  }
  func.func @transform_1(%arg0: i32) -> (i32, i32) {
    %c0_i32 = arith.constant 0 : i32
    %c0_i32_0 = arith.constant 0 : i32
    %c0_i32_1 = arith.constant 0 : i32
    return %c0_i32, %c0_i32_0 : i32, i32
  }
  func.func @transform_2(%arg0: i32) -> (i32, i32) {
    %c0_i32 = arith.constant 0 : i32
    %c0_i32_0 = arith.constant 0 : i32
    %c0_i32_1 = arith.constant 0 : i32
    return %c0_i32, %c0_i32_0 : i32, i32
  }
  func.func @transform_3(%arg0: i32) -> (i32, i32) {
    %c0_i32 = arith.constant 0 : i32
    %c0_i32_0 = arith.constant 0 : i32
    %c0_i32_1 = arith.constant 0 : i32
    return %c0_i32, %c0_i32_0 : i32, i32
  }
  func.func @transform_4(%arg0: i32) -> (i32, i32) {
    %c0_i32 = arith.constant 0 : i32
    %c0_i32_0 = arith.constant 0 : i32
    %c0_i32_1 = arith.constant 0 : i32
    return %c0_i32, %c0_i32_0 : i32, i32
  }
  func.func @transform_5(%arg0: i32) -> (i32, i32) {
    %c0_i32 = arith.constant 0 : i32
    %c0_i32_0 = arith.constant 0 : i32
    %c0_i32_1 = arith.constant 0 : i32
    return %c0_i32, %c0_i32_0 : i32, i32
  }
  func.func @transform_6(%arg0: i32) -> (i32, i32) {
    %c0_i32 = arith.constant 0 : i32
    %c0_i32_0 = arith.constant 0 : i32
    %c0_i32_1 = arith.constant 0 : i32
    return %c0_i32, %c0_i32_0 : i32, i32
  }
  func.func @transform_7(%arg0: i32) -> (i32, i32) {
    %c0_i32 = arith.constant 0 : i32
    %c0_i32_0 = arith.constant 0 : i32
    return %c0_i32, %arg0 : i32, i32
  }
}

</mosaic_0001>

<bundles_post_ra>
// kernel: tpu_custom_call.1
= control target key start
LH: loop header
LB: loop body
LE: loop exit
PB: predicated region body
PF: predicated region fallthrough
CT: control target
= control target key end

     0   :  { %s548_s0 = inlined_call_operand.hbm [shape: f32[8,16], index: 0, kind: input, shape index: {}]   ;;  %s549_s1 = inlined_call_operand.hbm [shape: f32[16,32], index: 1, kind: input, shape index: {}]   ;;  %s550_s2 = inlined_call_operand.vmem [shape: f32[1,32], index: 2, kind: input, shape index: {}]   ;;  %s551_s3 = inlined_call_operand.hbm [shape: f32[32,32], index: 3, kind: input, shape index: {}]   ;;  %s552_s4 = inlined_call_operand.vmem [shape: f32[1,32], index: 4, kind: input, shape index: {}]   ;;  %s553_s5 = inlined_call_operand.vmem [shape: f32[1,32], index: 5, kind: input, shape index: {}]   ;;  %s554_s6 = inlined_call_operand.<no memory space> [shape: f32[1,1], index: 6, kind: input, shape index: {}]   ;;  %s555_s7 = inlined_call_operand.hbm [shape: f32[1,8], index: 7, kind: output, shape index: {}]  }
   0x1   :  { %v12_v0 = vstv %s554_s6 }
   0x2   :  { %13 = vst [vmem:[#allocation2] sm:$0x1] %v12_v0 }
   0x3   :  { %14 = vsyncpa [#allocation4], 0 }
   0x4   :  { %15 = vsyncpa [#allocation7], 0 }
   0x5   :  { %16 = vsyncpa [#allocation5], 0  ;;  %s432_s26 = smov [#allocation6]   ;;  %s338_s30 = scalar_lea.hbm %s549_s1, 256 }
   0x6   :  { %s32_s27 = sshll.u32 %s432_s26, 4  ;;  %p339_p0 = scmp.ne.s32.totalorder %s549_s1, %s338_s30  ;;  %s33_s27 = int_to_ptr.vmem [resolvable:$true] %s32_s27 }
   0x7   :  { %p342_p1 = scmp.lt.u32.totalorder %s338_s30, %s549_s1 }
   0x9   :  { %p344_p2 = pnand %p342_p1, %p339_p0 }
   0xb   :  { %347 = shalt.err (!%p344_p2)
}
   0xc   :  { %s348_s6 = scalar_lea.vmem %s33_s27, 256  ;;  %p353_p4 = scmp.lt.s32.totalorder %s33_s27, %s33_s27 }
   0xd   :  { %p349_p3 = scmp.ne.s32.totalorder %s33_s27, %s348_s6  ;;  %p354_p5 = scmp.lt.s32.totalorder %s348_s6, %s348_s6 }
   0xf   :  { %p355_p6 = por %p354_p5, %p353_p4 }
  0x11   :  { %p356_p7 = pnand %p355_p6, %p349_p3 }
  0x13   :  { %359 = shalt.err (!%p356_p7)
}
  0x14   :  { %s433_s12 = smov 128   ;;  %s434_s13 = smov 8  }
  0x15   :  { %38 = dma.hbm_to_vmem [thread:$0]  %s549_s1, 256, %s33_s27, [#allocation7], %s433_s12, %s433_s12, %s434_s13  }
  0x16   :  { %s435_s16 = smov [#allocation3]   ;;  %s436_s18 = smov [#allocation8]  }
  0x17   :  { %s23_s17 = sshll.u32 %s435_s16, 4  ;;  %s46_s19 = sshll.u32 %s436_s18, 4  ;;  %s24_s17 = int_to_ptr.vmem [resolvable:$true] %s23_s17  ;;  %s47_s19 = int_to_ptr.vmem [resolvable:$true] %s46_s19 }
  0x18   :  { %s360_s22 = scalar_lea.hbm %s548_s0, 128 }
  0x19   :  { %p361_p8 = scmp.ne.s32.totalorder %s548_s0, %s360_s22  ;;  %p364_p9 = scmp.lt.u32.totalorder %s360_s22, %s548_s0 }
  0x1b   :  { %p366_p10 = pnand %p364_p9, %p361_p8 }
  0x1d   :  { %369 = shalt.err (!%p366_p10)
}
  0x1e   :  { %s370_s1 = scalar_lea.vmem %s24_s17, 128  ;;  %p375_p12 = scmp.lt.s32.totalorder %s24_s17, %s24_s17 }
  0x1f   :  { %p371_p11 = scmp.ne.s32.totalorder %s24_s17, %s370_s1  ;;  %p376_p13 = scmp.lt.s32.totalorder %s370_s1, %s370_s1 }
  0x21   :  { %p377_p0 = por %p376_p13, %p375_p12 }
  0x23   :  { %p378_p1 = pnand %p377_p0, %p371_p11 }
  0x25   :  { %381 = shalt.err (!%p378_p1)
}
  0x26   :  { %26 = dma.hbm_to_vmem [thread:$0]  %s548_s0, 128, %s24_s17, [#allocation4]  }
  0x27   :  { %s382_s8 = scalar_lea.hbm %s551_s3, 512 }
  0x28   :  { %p383_p2 = scmp.ne.s32.totalorder %s551_s3, %s382_s8  ;;  %p386_p3 = scmp.lt.u32.totalorder %s382_s8, %s551_s3 }
  0x2a   :  { %p388_p4 = pnand %p386_p3, %p383_p2 }
  0x2c   :  { %391 = shalt.err (!%p388_p4)
}
  0x2d   :  { %s392_s14 = scalar_lea.vmem %s47_s19, 512  ;;  %p397_p6 = scmp.lt.s32.totalorder %s47_s19, %s47_s19 }
  0x2e   :  { %p393_p5 = scmp.ne.s32.totalorder %s47_s19, %s392_s14  ;;  %p398_p7 = scmp.lt.s32.totalorder %s392_s14, %s392_s14 }
  0x30   :  { %p399_p8 = por %p398_p7, %p397_p6 }
  0x32   :  { %p400_p9 = pnand %p399_p8, %p393_p5 }
  0x34   :  { %403 = shalt.err (!%p400_p9)
}
  0x35   :  { %52 = dma.hbm_to_vmem [thread:$0]  %s551_s3, 512, %s47_s19, [#allocation7], %s433_s12, %s433_s12, %s434_s13  }
  0x36   :  { %426 = dma.done.wait [#allocation4], 128  }
  0x37   :  { %427 = vsyncadd [#allocation4], 4294967168 }
  0x38   :  { %428 = dma.done.wait [#allocation7], 768  }
  0x39   :  { %429 = vsyncadd [#allocation7], 4294966528  ;;  %v437_v1 = vmov 0.0|0.0   ;;  %vm438_vm0 = vmmov 0   ;;  %v439_v2 = vmov 0.0   ;;  %v69_v3 = vld [vmem:[#allocation6] sm:$0xff]  ;;  %v256_v28 = vlaneseq }
  0x3a   :  { %318 = vmatprep.subr.bf16.mxu0 %v437_v1  ;;  %304 = vmatprep.mubr.msk.f32.mxu0 %vm438_vm0, %v439_v2  ;;  %v70_v4 = vld [vmem:[#allocation6 + $0x8] sm:$0xff]  ;;  %v153_v6 = vld [vmem:[#allocation8] sm:$0xff]  ;;  %v154_v7 = vld [vmem:[#allocation8 + $0x8] sm:$0xff]  ;;  %vm78_vm1 = vcmask 130048   ;;  %vm164_vm2 = vcmask 261120   ;;  %v440_v18 = vmov 0  }
  0x3b   :  { %321 = vmatprep.subr.bf16.mxu1 %v437_v1  ;;  %315 = vmatprep.mubr.msk.f32.mxu1 %vm438_vm0, %v439_v2  ;;  %v319_v5 = vpack.c.bf16 %v70_v4, %v69_v3  ;;  %v322_v8 = vpack.c.bf16 %v154_v7, %v153_v6  ;;  %v68_v9 = vld [vmem:[#allocation3] sm:$0xff]  ;;  %v155_v10 = vld [vmem:[#allocation8 + $0x10] sm:$0xff]  ;;  %v156_v11 = vld [vmem:[#allocation8 + $0x18] sm:$0xff]  ;;  %v257_v29 = vshrl.u32 %v256_v28, 7  ;;  %v263_v32 = vand.u32 127, %v256_v28 }
  0x3c   :  { %v325_v12 = vpack.c.bf16 %v156_v11, %v155_v10  ;;  %v287_v13 = vld [vmem:[%s550_s2] ss:$0 sm:$0xff]  ;;  %337 = vset.pattern.permute.xlu0 %v440_v18  ;;  %s441_s2 = smov [#allocation9]   ;;  %vm269_vm3 = vcmask 57344  }
  0x3d   :  { %320 = vmatpush3.bf16.msra.mxu0 %v319_v5  ;;  %323 = vmatpush3.bf16.msra.mxu1 %v322_v8  ;;  %v289_v19 = vld [vmem:[%s552_s4] ss:$0 sm:$0xff]  ;;  %v258_v31 = vsub.s32 0, %v257_v29  ;;  %v266_v34 = vsub.s32 %v263_v32, %v257_v29  ;;  %s277_s4 = sshll.u32 %s441_s2, 4  ;;  %s278_s4 = int_to_ptr.vmem [resolvable:$true] %s277_s4 }
  0x3e   :  { %324 = vmatprep.subr.bf16.mxu1 %v437_v1  ;;  %v291_v23 = vld [vmem:[%s553_s5] ss:$0 sm:$0xff]  ;;  %s404_s5 = scalar_lea.vmem %s278_s4, 16  ;;  %s408_s19 = scalar_lea.vmem %s278_s4, 32 }
  0x3f   :  { %v250_v27 = vld [vmem:[#allocation2] sm:$0x1]  ;;  %p405_p10 = scmp.ne.s32.totalorder %s278_s4, %s404_s5  ;;  %p409_p11 = scmp.lt.s32.totalorder %s278_s4, %s278_s4 }
  0x40   :  { %305 = vmatmul.mubr.msk.f32.vlgmr.msra.gmra.mrb[0].mxu0 %vm78_vm1, %v68_v9  ;;  %p410_p12 = scmp.lt.s32.totalorder %s408_s19, %s404_s5 }
  0x41   :  { %326 = vmatpush3.bf16.msra.mxu1 %v325_v12 }
  0x42   :  { %p411_p13 = por %p410_p12, %p409_p11 }
  0x44   :  { %p412_p0 = pnand %p411_p13, %p405_p10 }
 0x113   :  { %v148_v14 = vpop.f32.mrb[0].mxu0 }
 0x114   :  { %v149_v15 = vadd.f32 %v287_v13, %v148_v14  ;;  %v306_v16 = vpop.f32.mrb[1].mxu0 }
 0x116   :  { %v152_v17 = vmax.f32 %v149_v15, 0.0 }
 0x118   :  { %316 = vmatmul.mubr.msk.f32.vlgmr.msra.gmra.mrb[0].mxu1 %vm164_vm2, %v152_v17 }
 0x1eb   :  { %v234_v20 = vpop.f32.mrb[0].mxu1 }
 0x1ec   :  { %v235_v21 = vadd.f32 %v289_v19, %v234_v20  ;;  %v317_v22 = vpop.f32.mrb[1].mxu1 }
 0x1ee   :  { %v238_v24 = vmax.f32 %v235_v21, 0.0 }
 0x1f0   :  { %v246_v25 = vmul.f32 %v291_v23, %v238_v24 }
 0x1f2   :  { %v247_v26 = vsel %vm164_vm2, %v246_v25, 0.0 }
 0x1f3   :  { %248 = vadd.xlane.f32.xlu0 %v247_v26 }
 0x209   :  { %253 = vperm.xlu0 %337, %v250_v27  }
 0x280   :  { %v249_v30 = vpop.xlane.xlu0 %248 }
 0x288   :  { %v254_v33 = vpop.permute.xlu0 %253 }
 0x289   :  { %v259_v35 = vrot.slane %v254_v33, %v258_v31 }
 0x28b   :  { %v260_v36 = vadd.f32 %v259_v35, %v249_v30 }
 0x28d   :  { %v267_v37 = vrot.slane %v260_v36, %v266_v34 }
 0x28f   :  { %270 = vst.msk [vmem:[#allocation9] sm:$0x1] %vm269_vm3, %v267_v37 }
 0x290   :  { %415 = shalt.err (!%p412_p0)
}
 0x291   :  { %s416_s22 = scalar_lea.hbm %s555_s7, 16 }
 0x292   :  { %p417_p1 = scmp.ne.s32.totalorder %s555_s7, %s416_s22  ;;  %p420_p2 = scmp.lt.u32.totalorder %s416_s22, %s555_s7 }
 0x294   :  { %p422_p3 = pnand %p420_p2, %p417_p1 }
 0x296   :  { %425 = shalt.err (!%p422_p3)
}
 0x297   :  { %280 = dma.vmem_to_hbm [thread:$0]  %s278_s4, 16, %s555_s7, [#allocation5]  }
 0x298   :  { %430 = dma.done.wait [#allocation5], 16  }
 0x299   :  { %431 = vsyncadd [#allocation5], 4294967280 }
 0x29a   :  { %284 = vsyncpa [#allocation4], 1 }
 0x29b   :  { %285 = vsyncpa [#allocation7], 1 }
 0x29c   :  { %286 = vsyncpa [#allocation5], 1 }

</bundles_post_ra>
